<compile_context>
chip_gen: v5e
topology: v5e:2x2
jax: 0.10.0
libtpu: 0.0.40
codegen_flags: <defaults>
</compile_context>

<pallas_src>
import functools

import jax
import jax.numpy as jnp
from jax import lax
from jax.experimental import pallas as pl
from jax.experimental.pallas import tpu as pltpu

LANES = 128
SUBLANES = 8
_ALIGN = SUBLANES * LANES  # 1024


def _hinge_sum_kernel(yp_ref, yt_ref, out_ref, *, tile_rows, steps_per_core,
                      valid_rows):
    c = pl.program_id(0)  # core split ("parallel")
    i = pl.program_id(1)  # row-tile within this core's range ("arbitrary")

    @pl.when(i == 0)
    def _():
        out_ref[...] = jnp.zeros_like(out_ref)

    # Cast to f32 on the VPU inside the kernel (inputs stay in native dtype).
    yp = yp_ref[...].astype(jnp.float32)
    yt = yt_ref[...].astype(jnp.float32)
    hinge = jnp.maximum(1.0 - yp * yt, 0.0)

    # Mask rows belonging to a partial last block or to a redundant (clamped)
    # trailing block.  Ragged-tail padding inside valid rows was done with 1
    # (hinge-neutral), so a row-level mask suffices.  Uses the UNCLAMPED
    # logical block index so redundant blocks contribute exactly zero.
    block = c * steps_per_core + i
    row0 = block * tile_rows
    row_ids = row0 + lax.broadcasted_iota(jnp.int32, (tile_rows, LANES), 0)
    hinge = jnp.where(row_ids < valid_rows, hinge, 0.0)

    # Per-step accumulation stays on the VPU: fold the tile onto the resident
    # (8, 128) output slab; the cross-lane reduce happens once, outside.
    out_ref[...] += jnp.sum(
        hinge.reshape(tile_rows // SUBLANES, SUBLANES, LANES), axis=0)


def svm_loss(y_pred, y_true, W, C=1.0, tile_rows=2048, core_splits=2):
    """Pallas implementation of SVMLoss.forward(y_pred, y_true, W)."""
    assert y_pred.shape == y_true.shape, "y_pred/y_true must have same shape"
    n = y_pred.size
    assert n > 0

    yp = y_pred.reshape(-1)
    yt = y_true.reshape(-1)

    # Pad only a ragged tail (with hinge-neutral 1: max(1 - 1*1, 0) == 0).
    # When n is already 1024-aligned this branch is skipped and the reshape
    # below is a free, metadata-only view (no extra HBM traffic).
    rem = n % _ALIGN
    if rem:
        pad = _ALIGN - rem
        yp = jnp.concatenate([yp, jnp.ones((pad,), yp.dtype)])
        yt = jnp.concatenate([yt, jnp.ones((pad,), yt.dtype)])
    rows = yp.size // LANES
    yp2 = yp.reshape(rows, LANES)
    yt2 = yt.reshape(rows, LANES)

    # Tile size: multiple of 32 rows (keeps bf16/int8 sublane packing dense),
    # clamped to the (8-aligned) row count.
    tile_rows = max(32, (int(tile_rows) // 32) * 32)
    tile_rows = min(tile_rows, rows)

    nblocks = pl.cdiv(rows, tile_rows)
    core_splits = max(1, min(int(core_splits), nblocks))
    steps_per_core = pl.cdiv(nblocks, core_splits)

    def in_map(c, i):
        # Clamp so redundant trailing blocks re-read a valid block (their
        # contribution is masked away in the kernel body).
        return (jnp.minimum(c * steps_per_core + i, nblocks - 1), 0)

    kernel = functools.partial(
        _hinge_sum_kernel, tile_rows=tile_rows,
        steps_per_core=steps_per_core, valid_rows=rows)

    # 2 inputs x 2 pipeline buffers x tile, doubled for headroom (+1 MiB).
    tile_bytes = tile_rows * LANES * yp2.dtype.itemsize
    vmem_limit = int(min(64 * 2**20,
                         max(16 * 2**20, 8 * tile_bytes + (1 << 20))))

    partials = pl.pallas_call(
        kernel,
        out_shape=jax.ShapeDtypeStruct((core_splits * SUBLANES, LANES),
                                       jnp.float32),
        grid_spec=pltpu.PrefetchScalarGridSpec(
            num_scalar_prefetch=0,
            grid=(core_splits, steps_per_core),
            in_specs=[
                pl.BlockSpec((tile_rows, LANES), in_map),
                pl.BlockSpec((tile_rows, LANES), in_map),
            ],
            out_specs=pl.BlockSpec((SUBLANES, LANES), lambda c, i: (c, 0)),
        ),
        compiler_params=pltpu.CompilerParams(
            dimension_semantics=("parallel", "arbitrary"),
            vmem_limit_bytes=vmem_limit),
    )(yp2, yt2)

    # Hinge mean over the ORIGINAL element count (padding contributes zero).
    hinge_mean = jnp.sum(partials) / jnp.float32(n)

    # W's L2 term: trivial O(D) reduce done with plain XLA (perf-review
    # option (a)) so W is never held as a resident VMEM block.
    reg = 0.5 * jnp.sum(W.astype(jnp.float32) ** 2)

    return reg + jnp.asarray(C, jnp.float32) * hinge_mean


def svm_loss_ref(y_pred, y_true, W, C=1.0):
    """Pure-JAX reference matching the PyTorch forward exactly."""
    yp = y_pred.astype(jnp.float32)
    yt = y_true.astype(jnp.float32)
    w = W.astype(jnp.float32)
    return jnp.sum(w ** 2) / 2.0 + C * jnp.mean(jnp.maximum(1.0 - yp * yt, 0.0))


if __name__ == "__main__":
    key = jax.random.PRNGKey(0)
    k1, k2, k3 = jax.random.split(key, 3)

    # Small shapes consistent with the module: scores, +/-1 labels, weights.
    batch, hidden = 8, 32
    y_pred = jax.random.normal(k1, (batch,), dtype=jnp.float32)
    y_true = jnp.sign(jax.random.normal(k2, (batch,), dtype=jnp.float32))
    W = jax.random.normal(k3, (hidden,), dtype=jnp.float32) * 0.1

    loss = svm_loss(y_pred, y_true, W, C=1.0)
    jax.block_until_ready(loss)
    ref = svm_loss_ref(y_pred, y_true, W, C=1.0)
    assert jnp.allclose(loss, ref, rtol=1e-5, atol=1e-5), (loss, ref)

    # 1024-aligned input (zero-copy reshape path) with small tiles so the
    # multi-block grid, 2-way core split, and redundant-block clamping/masking
    # are exercised: rows=96, tile=32 -> nblocks=3, grid=(2,2).
    k4, k5, k6 = jax.random.split(jax.random.PRNGKey(1), 3)
    yb = jax.random.normal(k4, (96, 128), dtype=jnp.float32)
    tb = jnp.sign(jax.random.normal(k5, (96, 128), dtype=jnp.float32))
    Wb = jax.random.normal(k6, (300,), dtype=jnp.float32) * 0.1
    loss2 = svm_loss(yb, tb, Wb, C=0.5, tile_rows=32, core_splits=2)
    jax.block_until_ready(loss2)
    ref2 = svm_loss_ref(yb, tb, Wb, C=0.5)
    assert jnp.allclose(loss2, ref2, rtol=1e-5, atol=1e-5), (loss2, ref2)

    # Partial-last-block path (rows=40, tile=32 -> last block only 8 valid
    # rows) plus a ragged-tail input (2100 elements).
    k7, k8, k9, k10 = jax.random.split(jax.random.PRNGKey(2), 4)
    yc = jax.random.normal(k7, (40, 128), dtype=jnp.float32)
    tc = jnp.sign(jax.random.normal(k8, (40, 128), dtype=jnp.float32))
    loss3 = svm_loss(yc, tc, Wb, C=2.0, tile_rows=32, core_splits=2)
    jax.block_until_ready(loss3)
    ref3 = svm_loss_ref(yc, tc, Wb, C=2.0)
    assert jnp.allclose(loss3, ref3, rtol=1e-5, atol=1e-5), (loss3, ref3)

    yd = jax.random.normal(k9, (2100,), dtype=jnp.float32)
    td = jnp.sign(jax.random.normal(k10, (2100,), dtype=jnp.float32))
    loss4 = svm_loss(yd, td, Wb, C=0.25)
    jax.block_until_ready(loss4)
    ref4 = svm_loss_ref(yd, td, Wb, C=0.25)
    assert jnp.allclose(loss4, ref4, rtol=1e-5, atol=1e-5), (loss4, ref4)

    print("KERNEL_OK")
</pallas_src>

<mosaic_0001>
module attributes {stable_mosaic.version = 11 : i64} {
  func.func @_hinge_sum_kernel(%arg0: i32, %arg1: i32, %arg2: memref<8x128xf32, #tpu.memory_space<vmem>>, %arg3: memref<8x128xf32, #tpu.memory_space<vmem>>, %arg4: memref<8x128xf32, #tpu.memory_space<vmem>>) attributes {dimension_semantics = [#tpu.dimension_semantics<parallel>, #tpu.dimension_semantics<arbitrary>], iteration_bounds = array<i64: 1, 1>, scalar_prefetch = 0 : i64, scratch_operands = 0 : i64, tpu.core_type = #tpu.core_type<tc>, window_params = [{transform_indices = @transform_0, window_bounds = array<i64: 8, 128>}, {transform_indices = @transform_1, window_bounds = array<i64: 8, 128>}, {transform_indices = @transform_2, window_bounds = array<i64: 8, 128>}]} {
    %c0_i32 = arith.constant 0 : i32
    %0 = arith.cmpi eq, %arg1, %c0_i32 : i32
    %1 = arith.extui %0 : i1 to i32
    %c0_i32_0 = arith.constant 0 : i32
    %2 = arith.cmpi ne, %1, %c0_i32_0 : i32
    scf.if %2 {
      %cst_12 = arith.constant 0.000000e+00 : f32
      %25 = vector.broadcast %cst_12 : f32 to vector<8x128xf32>
      %c0_13 = arith.constant 0 : index
      %c0_14 = arith.constant 0 : index
      %26 = vector.load %arg4[%c0_13, %c0_14] : memref<8x128xf32, #tpu.memory_space<vmem>>, vector<8x128xf32>
      tpu.vector_store %arg4[%c0_13, %c0_14], %25 {strides = array<i32>} : memref<8x128xf32, #tpu.memory_space<vmem>>, vector<8x128xf32>,
    } else {
    }
    %c0 = arith.constant 0 : index
    %c0_1 = arith.constant 0 : index
    %3 = vector.load %arg2[%c0, %c0_1] : memref<8x128xf32, #tpu.memory_space<vmem>>, vector<8x128xf32>
    %c0_2 = arith.constant 0 : index
    %c0_3 = arith.constant 0 : index
    %4 = vector.load %arg3[%c0_2, %c0_3] : memref<8x128xf32, #tpu.memory_space<vmem>>, vector<8x128xf32>
    %5 = arith.mulf %3, %4 : vector<8x128xf32>
    %cst = arith.constant 1.000000e+00 : f32
    %6 = vector.broadcast %cst : f32 to vector<8x128xf32>
    %7 = arith.subf %6, %5 : vector<8x128xf32>
    %cst_4 = arith.constant 0.000000e+00 : f32
    %8 = vector.broadcast %cst_4 : f32 to vector<8x128xf32>
    %9 = arith.maximumf %7, %8 : vector<8x128xf32>
    %c1_i32 = arith.constant 1 : i32
    %10 = arith.muli %arg0, %c1_i32 : i32
    %11 = arith.addi %10, %arg1 : i32
    %c8_i32 = arith.constant 8 : i32
    %12 = arith.muli %11, %c8_i32 : i32
    %13 = tpu.iota {dimensions = array<i32: 0>} : vector<8x128xi32>
    %14 = vector.broadcast %12 : i32 to vector<8x128xi32>
    %15 = arith.addi %14, %13 : vector<8x128xi32>
    %c8_i32_5 = arith.constant 8 : i32
    %16 = vector.broadcast %c8_i32_5 : i32 to vector<8x128xi32>
    %17 = arith.cmpi slt, %15, %16 : vector<8x128xi32>
    %cst_6 = arith.constant 0.000000e+00 : f32
    %18 = vector.broadcast %cst_6 : f32 to vector<8x128xf32>
    %19 = arith.select %17, %9, %18 : vector<8x128xi1>, vector<8x128xf32>
    %c0_7 = arith.constant 0 : index
    %c0_8 = arith.constant 0 : index
    %20 = vector.load %arg4[%c0_7, %c0_8] : memref<8x128xf32, #tpu.memory_space<vmem>>, vector<8x128xf32>
    %21 = vector.shape_cast %19 : vector<8x128xf32> to vector<1x8x128xf32>
    %cst_9 = arith.constant dense<0.000000e+00> : vector<8x128xf32>
    %22 = vector.multi_reduction <add>, %21, %cst_9 [0] : vector<1x8x128xf32> to vector<8x128xf32>
    %23 = arith.addf %20, %22 : vector<8x128xf32>
    %c0_10 = arith.constant 0 : index
    %c0_11 = arith.constant 0 : index
    %24 = vector.load %arg4[%c0_10, %c0_11] : memref<8x128xf32, #tpu.memory_space<vmem>>, vector<8x128xf32>
    tpu.vector_store %arg4[%c0_10, %c0_11], %23 {strides = array<i32>} : memref<8x128xf32, #tpu.memory_space<vmem>>, vector<8x128xf32>,
    return
  }
  func.func @transform_0(%arg0: i32, %arg1: i32) -> (i32, i32) {
    %c1_i32 = arith.constant 1 : i32
    %0 = arith.muli %arg0, %c1_i32 : i32
    %1 = arith.addi %0, %arg1 : i32
    %c0_i32 = arith.constant 0 : i32
    %2 = arith.minsi %1, %c0_i32 : i32
    %c0_i32_0 = arith.constant 0 : i32
    %c0_i32_1 = arith.constant 0 : i32
    return %2, %c0_i32_0 : i32, i32
  }
  func.func @transform_1(%arg0: i32, %arg1: i32) -> (i32, i32) {
    %c1_i32 = arith.constant 1 : i32
    %0 = arith.muli %arg0, %c1_i32 : i32
    %1 = arith.addi %0, %arg1 : i32
    %c0_i32 = arith.constant 0 : i32
    %2 = arith.minsi %1, %c0_i32 : i32
    %c0_i32_0 = arith.constant 0 : i32
    %c0_i32_1 = arith.constant 0 : i32
    return %2, %c0_i32_0 : i32, i32
  }
  func.func @transform_2(%arg0: i32, %arg1: i32) -> (i32, i32) {
    %c0_i32 = arith.constant 0 : i32
    %c0_i32_0 = arith.constant 0 : i32
    return %arg0, %c0_i32 : i32, i32
  }
}

</mosaic_0001>

<bundles_post_ra>
// kernel: tpu_custom_call.1
= control target key start
LH: loop header
LB: loop body
LE: loop exit
PB: predicated region body
PF: predicated region fallthrough
CT: control target
= control target key end

     0   :  { %7 = vsyncpa [#allocation3], 0  ;;  %s209_s0 = inlined_call_operand.hbm [shape: f32[8,128], index: 0, kind: input, shape index: {}]   ;;  %s210_s1 = inlined_call_operand.hbm [shape: f32[8,128], index: 1, kind: input, shape index: {}]   ;;  %s211_s2 = inlined_call_operand.hbm [shape: f32[8,128], index: 2, kind: output, shape index: {}]  }
   0x1   :  { %8 = vsyncpa [#allocation6], 0 }
   0x2   :  { %9 = vsyncpa [#allocation4], 0  ;;  %s20_s11 = sshll.u32 %s209_s0, 4  ;;  %s182_s12 = smov [#allocation2]   ;;  %s21_s11 = int_to_ptr.hbm [resolvable:$true] %s20_s11 }
   0x3   :  { %s22_s13 = sshll.u32 %s182_s12, 4  ;;  %s36_s16 = sshll.u32 %s210_s1, 4  ;;  %s23_s13 = int_to_ptr.vmem [resolvable:$true] %s22_s13  ;;  %s37_s16 = int_to_ptr.hbm [resolvable:$true] %s36_s16 }
   0x4   :  { %25 = dma.hbm_to_vmem [thread:$0]  %s21_s11, 128, %s23_s13, [#allocation3]  }
   0x5   :  { %s183_s17 = smov [#allocation5]  }
   0x6   :  { %s38_s18 = sshll.u32 %s183_s17, 4  ;;  %s39_s18 = int_to_ptr.vmem [resolvable:$true] %s38_s18 }
   0x7   :  { %41 = dma.hbm_to_vmem [thread:$0]  %s37_s16, 128, %s39_s18, [#allocation6]  }
   0x8   :  { %176 = dma.done.wait [#allocation3], 128  }
   0x9   :  { %177 = vsyncadd [#allocation3], 4294967168 }
   0xa   :  { %178 = dma.done.wait [#allocation6], 128  }
   0xb   :  { %179 = vsyncadd [#allocation6], 4294967168  ;;  %v61_v0 = vld [vmem:[#allocation2] sm:$0xff]  ;;  %v62_v1 = vld [vmem:[#allocation5] sm:$0xff]  ;;  %s184_s0 = smov [#allocation7]   ;;  %s85_s1 = sshll.u32 %s211_s2, 4  ;;  %s86_s1 = int_to_ptr.hbm [resolvable:$true] %s85_s1 }
   0xc   :  { %v63_v2 = vmul.f32 %v62_v1, %v61_v0  ;;  %s83_s19 = sshll.u32 %s184_s0, 4  ;;  %s84_s19 = int_to_ptr.vmem [resolvable:$true] %s83_s19 }
   0xe   :  { %v64_v3 = vsub.f32 1.0, %v63_v2 }
  0x10   :  { %v65_v4 = vmax.f32 %v64_v3, 0.0 }
  0x12   :  { %77 = vst [vmem:[#allocation7] sm:$0xff] %v65_v4 }
  0x13   :  { %88 = dma.vmem_to_hbm [thread:$0]  %s84_s19, 128, %s86_s1, [#allocation4]  }
  0x14   :  { %180 = dma.done.wait [#allocation4], 128  }
  0x15   :  { %181 = vsyncadd [#allocation4], 4294967168 }
  0x16   :  { %93 = vsyncpa [#allocation3], 1 }
  0x17   :  { %94 = vsyncpa [#allocation6], 1 }
  0x18   :  { %95 = vsyncpa [#allocation4], 1 }

</bundles_post_ra>
